<compile_context>
chip_gen: v7x
topology: tpu7x:2x2x1
jax: 0.10.0
libtpu: 0.0.40
codegen_flags: <defaults>
</compile_context>

<pallas_src>
import functools

import jax
import jax.numpy as jnp
from jax.experimental import pallas as pl
from jax.experimental.pallas import tpu as pltpu


# ------------------------- generation-aware sizing ---------------------------

def _tpu_vmem_capacity():
    try:
        return int(pltpu.get_tpu_info().vmem_capacity_bytes)
    except Exception:
        return None


_VMEM_CAP = _tpu_vmem_capacity()
if _VMEM_CAP is None:
    _VMEM_LIMIT_BYTES = 48 * 1024 * 1024
    _LIN_TM, _LIN_TN, _LIN_TK = 256, 256, 1024
elif _VMEM_CAP >= 96 * 1024 * 1024:          # v5e / v6e: 128 MiB physical VMEM
    _VMEM_LIMIT_BYTES = min(100 * 1024 * 1024, _VMEM_CAP - 8 * 1024 * 1024)
    _LIN_TM, _LIN_TN, _LIN_TK = 512, 512, 1024
else:                                        # v7x: 64 MiB VMEM -> K-biased tiles
    _VMEM_LIMIT_BYTES = min(56 * 1024 * 1024, int(_VMEM_CAP * 0.85))
    _LIN_TM, _LIN_TN, _LIN_TK = 256, 256, 1024

_ATT_TQ, _ATT_TK = 256, 256                  # fill the 256-wide MXU on v6e/v7x


def _pick_tile(dim_size, target, align):
    """Largest tile <= target that divides dim_size and is `align`-aligned."""
    if dim_size <= target:
        return dim_size
    t = (target // align) * align
    while t > align and dim_size % t != 0:
        t -= align
    if t >= align and dim_size % t == 0:
        return t
    return dim_size  # fallback: full dim (always a legal block)


# ---------------- Tiled linear (+fused LayerNorm/GELU/residual) --------------

def _linear_kernel(*refs, use_gelu, has_residual, has_ln, single_k, ln_eps):
    x_ref, w_ref, b_ref = refs[:3]
    i = 3
    if has_ln:
        g_ref, beta_ref = refs[i], refs[i + 1]
        i += 2
    if has_residual:
        r_ref = refs[i]
        i += 1
    o_ref = refs[i]
    acc_ref = None if single_k else refs[i + 1]

    x = x_ref[...]
    if has_ln:
        # Fused pre-LayerNorm (requires the x block to span the full feature dim).
        xf = x.astype(jnp.float32)
        mu = jnp.mean(xf, axis=-1, keepdims=True)
        var = jnp.mean((xf - mu) ** 2, axis=-1, keepdims=True)
        xf = (xf - mu) * jax.lax.rsqrt(var + ln_eps)
        xf = xf * g_ref[...] + beta_ref[...]
        x = xf.astype(jnp.bfloat16)

    def epilogue(y):
        y = y + b_ref[...].astype(jnp.float32)
        if use_gelu:
            y = jax.nn.gelu(y, approximate=True)  # tanh GELU (erf in PyTorch ref)
        if has_residual:
            y = y + r_ref[...].astype(jnp.float32)
        o_ref[...] = y.astype(o_ref.dtype)

    if single_k:
        epilogue(jnp.dot(x, w_ref[...], preferred_element_type=jnp.float32))
    else:
        @pl.when(pl.program_id(2) == 0)
        def _():
            acc_ref[...] = jnp.zeros_like(acc_ref)

        acc_ref[...] += jnp.dot(x, w_ref[...], preferred_element_type=jnp.float32)

        @pl.when(pl.program_id(2) == pl.num_programs(2) - 1)
        def _():
            epilogue(acc_ref[...])


def linear(x2d, w, b, *, ln=None, use_gelu=False, residual=None, out_dtype=None,
           ln_eps=1e-5, tm_target=None, tn_target=None, tk_target=None):
    """(M,K) @ (K,N) + b [pre-LN] [-> GELU] [-> + residual]; f32 MXU accumulate."""
    M, K = x2d.shape
    K2, N = w.shape
    assert K == K2
    tm = _pick_tile(M, tm_target or _LIN_TM, 16)    # bf16 packs 16 rows/vreg
    tn = _pick_tile(N, tn_target or _LIN_TN, 128)
    tk = K if ln is not None else _pick_tile(K, tk_target or _LIN_TK, 128)
    grid = (M // tm, N // tn, K // tk)
    single_k = grid[2] == 1
    out_dtype = out_dtype if out_dtype is not None else x2d.dtype

    in_specs = [pl.BlockSpec((tm, tk), lambda i, j, k: (i, k)),
                pl.BlockSpec((tk, tn), lambda i, j, k: (k, j)),
                pl.BlockSpec((1, tn), lambda i, j, k: (0, j))]
    args = [x2d, w, b.reshape(1, N)]
    if ln is not None:
        gamma, beta = ln
        in_specs += [pl.BlockSpec((1, tk), lambda i, j, k: (0, 0)),
                     pl.BlockSpec((1, tk), lambda i, j, k: (0, 0))]
        args += [gamma.reshape(1, K).astype(jnp.float32),
                 beta.reshape(1, K).astype(jnp.float32)]
    if residual is not None:
        in_specs.append(pl.BlockSpec((tm, tn), lambda i, j, k: (i, j)))
        args.append(residual)

    kernel = functools.partial(
        _linear_kernel, use_gelu=use_gelu, has_residual=residual is not None,
        has_ln=ln is not None, single_k=single_k, ln_eps=ln_eps)
    cost = pl.CostEstimate(
        flops=2 * M * N * K,
        transcendentals=M * N if use_gelu else 0,
        bytes_accessed=2 * (M * K + K * N + 2 * M * N))

    return pl.pallas_call(
        kernel,
        out_shape=jax.ShapeDtypeStruct((M, N), out_dtype),
        grid=grid,
        in_specs=in_specs,
        out_specs=pl.BlockSpec((tm, tn), lambda i, j, k: (i, j)),
        scratch_shapes=[] if single_k else [pltpu.VMEM((tm, tn), jnp.float32)],
        compiler_params=pltpu.CompilerParams(
            dimension_semantics=("parallel", "parallel", "arbitrary"),
            vmem_limit_bytes=_VMEM_LIMIT_BYTES),
        cost_estimate=cost,
    )(*args)


# ---------------- Flash-style cosine-sim causal attention --------------------

def _flash_cosine_attn_kernel(q_ref, k_ref, v_ref, o_ref,
                              m_sc, l_sc, acc_sc, qn_sc,
                              *, temperature, causal, tq, tk, dh, hpb):
    qi = pl.program_id(2)
    ki = pl.program_id(3)

    @pl.when(ki == 0)
    def _():
        # Normalize Q once per q-tile (hoisted out of the KV loop) and reset the
        # online-softmax state.
        q = q_ref[0].astype(jnp.float32)
        parts = []
        for j in range(hpb):
            qj = q[:, j * dh:(j + 1) * dh]
            qj = qj * jax.lax.rsqrt(jnp.sum(qj * qj, axis=-1, keepdims=True) + 1e-12)
            parts.append(qj)
        qn_sc[...] = jnp.concatenate(parts, axis=-1).astype(qn_sc.dtype)
        m_sc[...] = jnp.full(m_sc.shape, -jnp.inf, jnp.float32)
        l_sc[...] = jnp.zeros(l_sc.shape, jnp.float32)
        acc_sc[...] = jnp.zeros(acc_sc.shape, jnp.float32)

    def compute():
        k = k_ref[0].astype(jnp.float32)
        v = v_ref[0]
        if causal:
            row = qi * tq + jax.lax.broadcasted_iota(jnp.int32, (tq, tk), 0)
            col = ki * tk + jax.lax.broadcasted_iota(jnp.int32, (tq, tk), 1)
            mask = col > row
        new_acc = []
        for j in range(hpb):
            # TODO(synk): fold K's per-head l2norm into the QKV linear epilogue to
            # drop the remaining per-(q-tile, k-tile) renormalization of K.
            kj = k[:, j * dh:(j + 1) * dh]
            kj = kj * jax.lax.rsqrt(jnp.sum(kj * kj, axis=-1, keepdims=True) + 1e-12)
            qj = qn_sc[:, j * dh:(j + 1) * dh]
            s = jax.lax.dot_general(
                qj, kj.astype(qj.dtype),
                dimension_numbers=(((1,), (1,)), ((), ())),
                preferred_element_type=jnp.float32) * temperature    # (tq, tk)
            if causal:
                # Safe: the KV loop always starts at ki==0 where every causal row
                # has >=1 unmasked column, so no row is fully masked in its first
                # computed tile (fully-masked tiles are skipped below).
                s = jnp.where(mask, jnp.float32(-1e30), s)
            m_prev = m_sc[j]
            m_new = jnp.maximum(m_prev, jnp.max(s, axis=-1, keepdims=True))
            alpha = jnp.exp(m_prev - m_new)
            p = jnp.exp(s - m_new)
            l_sc[j] = alpha * l_sc[j] + jnp.sum(p, axis=-1, keepdims=True)
            pv = jnp.dot(p.astype(v.dtype), v[:, j * dh:(j + 1) * dh],
                         preferred_element_type=jnp.float32)
            new_acc.append(alpha * acc_sc[:, j * dh:(j + 1) * dh] + pv)
            m_sc[j] = m_new
        acc_sc[...] = jnp.concatenate(new_acc, axis=-1)

    if causal:
        # Fully-masked KV tiles: compute skipped here, DMA elided via the clamped
        # K/V index_map in the wrapper.
        pl.when(ki * tk < (qi + 1) * tq)(compute)
    else:
        compute()

    @pl.when(ki == pl.num_programs(3) - 1)
    def _():
        parts = []
        for j in range(hpb):
            inv_l = pl.reciprocal(l_sc[j], approx=True)
            parts.append(acc_sc[:, j * dh:(j + 1) * dh] * inv_l)
        o_ref[0] = jnp.concatenate(parts, axis=-1).astype(o_ref.dtype)


def cosine_flash_attention_fused(qkv, heads, dim_head, temperature, causal=True,
                                 tq_target=None, tk_target=None):
    """qkv: (B, N, 3*H*Dh) fused head-major QKV -> (B, N, H*Dh) attention output.

    q/k/v are read straight out of the fused buffer via index_maps (no head
    transposes); `hpb` heads are packed per grid step so blocks are lane-dense.
    """
    B, N, three_inner = qkv.shape
    H, Dh = heads, dim_head
    inner = H * Dh
    assert three_inner == 3 * inner
    if Dh % 128 == 0:
        hpb = 1
    elif 128 % Dh == 0:
        hpb = 128 // Dh
    else:
        # TODO(synk): fall back to a per-head (B*H, N, Dh) layout for odd head dims.
        raise NotImplementedError(f"dim_head={Dh} must divide (or be a multiple of) 128")
    assert H % hpb == 0, f"heads={H} must be a multiple of {hpb} for lane packing"
    lane = hpb * Dh
    hg = H // hpb

    tq = _pick_tile(N, tq_target or _ATT_TQ, 16)
    tk = _pick_tile(N, tk_target or _ATT_TK, 128)
    grid = (B, hg, N // tq, N // tk)

    q_off, k_off, v_off = 0, inner // lane, 2 * inner // lane

    def q_map(b, g, qi, ki):
        return (b, qi, q_off + g)

    def make_kv_map(off):
        if causal:
            def kv_map(b, g, qi, ki):
                # Clamp the block index for fully-masked causal tiles so the
                # pipeline re-targets an already-resident block and elides the DMA.
                return (b, jnp.minimum(ki, ((qi + 1) * tq - 1) // tk), off + g)
        else:
            def kv_map(b, g, qi, ki):
                return (b, ki, off + g)
        return kv_map

    kernel = functools.partial(_flash_cosine_attn_kernel,
                               temperature=float(temperature), causal=causal,
                               tq=tq, tk=tk, dh=Dh, hpb=hpb)
    # Note: pl.Buffered(3) on the K/V specs is a further (optional) latency knob.
    return pl.pallas_call(
        kernel,
        out_shape=jax.ShapeDtypeStruct((B, N, inner), qkv.dtype),
        grid=grid,
        in_specs=[pl.BlockSpec((1, tq, lane), q_map),
                  pl.BlockSpec((1, tk, lane), make_kv_map(k_off)),
                  pl.BlockSpec((1, tk, lane), make_kv_map(v_off))],
        out_specs=pl.BlockSpec((1, tq, lane), lambda b, g, qi, ki: (b, qi, g)),
        scratch_shapes=[pltpu.VMEM((hpb, tq, 1), jnp.float32),   # running max
                        pltpu.VMEM((hpb, tq, 1), jnp.float32),   # running denom
                        pltpu.VMEM((tq, lane), jnp.float32),     # output accum
                        pltpu.VMEM((tq, lane), qkv.dtype)],      # normalized Q
        compiler_params=pltpu.CompilerParams(
            dimension_semantics=("parallel", "parallel", "parallel", "arbitrary"),
            vmem_limit_bytes=_VMEM_LIMIT_BYTES),
    )(qkv, qkv, qkv)


# ------------------------------ model definition -----------------------------

def init_params(key, dim, vocab_size, depth, heads, dim_head,
                dtype=jnp.bfloat16):
    """Weights stored in bf16 (MXU-native), LayerNorm params / biases in f32."""
    def nrm(k, shape, scale=0.02):
        return (scale * jax.random.normal(k, shape, jnp.float32)).astype(dtype)

    keys = jax.random.split(key, 4 + depth)
    inner = heads * dim_head
    ff_mult = 4
    params = {
        "heads": heads,
        "dim_head": dim_head,
        "tok_emb": nrm(keys[0], (vocab_size, dim)),
        "final_ln_g": jnp.ones((dim,), jnp.float32),
        "final_ln_b": jnp.zeros((dim,), jnp.float32),
        "w_out": nrm(keys[1], (dim, vocab_size)),
        "b_out": jnp.zeros((vocab_size,), jnp.float32),
        "layers": [],
    }
    for l in range(depth):
        lk = jax.random.split(keys[4 + l], 4)
        params["layers"].append({
            "attn_ln_g": jnp.ones((dim,), jnp.float32),
            "attn_ln_b": jnp.zeros((dim,), jnp.float32),
            "w_qkv": nrm(lk[0], (dim, 3 * inner)),
            "b_qkv": jnp.zeros((3 * inner,), jnp.float32),
            "w_o": nrm(lk[1], (inner, dim)),
            "b_o": jnp.zeros((dim,), jnp.float32),
            "ff_ln_g": jnp.ones((dim,), jnp.float32),
            "ff_ln_b": jnp.zeros((dim,), jnp.float32),
            "w_ff1": nrm(lk[2], (dim, ff_mult * dim)),
            "b_ff1": jnp.zeros((ff_mult * dim,), jnp.float32),
            "w_ff2": nrm(lk[3], (ff_mult * dim, dim)),
            "b_ff2": jnp.zeros((dim,), jnp.float32),
        })
    return params


def meta_transformer_forward(params, x_ids, temperature=15.5, causal=True):
    """Equivalent of MetaTransformer.forward(x) == transformer_lm(x)."""
    B, N = x_ids.shape
    D = params["tok_emb"].shape[1]
    H, Dh = params["heads"], params["dim_head"]
    inner = H * Dh

    h2d = params["tok_emb"][x_ids].reshape(B * N, D)   # embedding gather (JAX glue)

    for layer in params["layers"]:
        # --- cosine-sim causal self-attention (fused pre-LN + residual) ---
        qkv = linear(h2d, layer["w_qkv"], layer["b_qkv"],
                     ln=(layer["attn_ln_g"], layer["attn_ln_b"]))
        attn = cosine_flash_attention_fused(qkv.reshape(B, N, 3 * inner),
                                            H, Dh, temperature, causal=causal)
        h2d = linear(attn.reshape(B * N, inner), layer["w_o"], layer["b_o"],
                     residual=h2d)

        # --- feed-forward (fused pre-LN, GELU, residual) ---
        ff = linear(h2d, layer["w_ff1"], layer["b_ff1"],
                    ln=(layer["ff_ln_g"], layer["ff_ln_b"]), use_gelu=True)
        h2d = linear(ff, layer["w_ff2"], layer["b_ff2"], residual=h2d)

    # --- final LayerNorm fused into the vocab projection (f32 logits) ---
    logits = linear(h2d, params["w_out"], params["b_out"],
                    ln=(params["final_ln_g"], params["final_ln_b"]),
                    out_dtype=jnp.float32)
    return logits.reshape(B, N, -1)


# --------------------------------- driver ------------------------------------

if __name__ == "__main__":
    key = jax.random.PRNGKey(0)
    k_params, k_inp = jax.random.split(key)

    B, N = 2, 16
    dim, vocab_size, depth, heads, dim_head = 128, 256, 2, 2, 64

    params = init_params(k_params, dim, vocab_size, depth, heads, dim_head)
    x = jax.random.randint(k_inp, (B, N), 0, vocab_size, dtype=jnp.int32)

    logits = meta_transformer_forward(params, x)
    logits = jax.block_until_ready(logits)

    assert logits.shape == (B, N, vocab_size), logits.shape
    assert jnp.all(jnp.isfinite(logits)), "non-finite logits"
    print("KERNEL_OK")
</pallas_src>

<mosaic_0001>
module attributes {stable_mosaic.version = 11 : i64} {
  func.func @_linear_kernel(%arg0: i32, %arg1: i32, %arg2: i32, %arg3: memref<32x128xbf16, #tpu.memory_space<vmem>>, %arg4: memref<128x128xbf16, #tpu.memory_space<vmem>>, %arg5: memref<1x128xf32, #tpu.memory_space<vmem>>, %arg6: memref<1x128xf32, #tpu.memory_space<vmem>>, %arg7: memref<1x128xf32, #tpu.memory_space<vmem>>, %arg8: memref<32x128xbf16, #tpu.memory_space<vmem>>) attributes {dimension_semantics = [#tpu.dimension_semantics<parallel>, #tpu.dimension_semantics<parallel>, #tpu.dimension_semantics<arbitrary>], iteration_bounds = array<i64: 1, 3, 1>, scalar_prefetch = 0 : i64, scratch_operands = 0 : i64, tpu.core_type = #tpu.core_type<tc>, window_params = [{transform_indices = @transform_0, window_bounds = array<i64: 32, 128>}, {transform_indices = @transform_1, window_bounds = array<i64: 128, 128>}, {transform_indices = @transform_2, window_bounds = array<i64: 1, 128>}, {pipeline_mode = #tpu.pipeline_mode<synchronous>, transform_indices = @transform_3, window_bounds = array<i64: 1, 128>}, {pipeline_mode = #tpu.pipeline_mode<synchronous>, transform_indices = @transform_4, window_bounds = array<i64: 1, 128>}, {transform_indices = @transform_5, window_bounds = array<i64: 32, 128>}]} {
    %c0 = arith.constant 0 : index
    %c0_0 = arith.constant 0 : index
    %0 = vector.load %arg3[%c0, %c0_0] : memref<32x128xbf16, #tpu.memory_space<vmem>>, vector<32x128xbf16>
    %1 = arith.extf %0 : vector<32x128xbf16> to vector<32x128xf32>
    %cst = arith.constant dense<0.000000e+00> : vector<32xf32>
    %2 = vector.multi_reduction <add>, %1, %cst [1] : vector<32x128xf32> to vector<32xf32>
    %3 = vector.shape_cast %2 : vector<32xf32> to vector<32x1xf32>
    %cst_1 = arith.constant 1.280000e+02 : f32
    %4 = vector.broadcast %cst_1 : f32 to vector<32x1xf32>
    %5 = arith.divf %3, %4 : vector<32x1xf32>
    %6 = vector.broadcast %5 : vector<32x1xf32> to vector<32x128xf32>
    %7 = arith.subf %1, %6 : vector<32x128xf32>
    %8 = arith.mulf %7, %7 : vector<32x128xf32>
    %cst_2 = arith.constant dense<0.000000e+00> : vector<32xf32>
    %9 = vector.multi_reduction <add>, %8, %cst_2 [1] : vector<32x128xf32> to vector<32xf32>
    %10 = vector.shape_cast %9 : vector<32xf32> to vector<32x1xf32>
    %cst_3 = arith.constant 1.280000e+02 : f32
    %11 = vector.broadcast %cst_3 : f32 to vector<32x1xf32>
    %12 = arith.divf %10, %11 : vector<32x1xf32>
    %13 = vector.broadcast %5 : vector<32x1xf32> to vector<32x128xf32>
    %14 = arith.subf %1, %13 : vector<32x128xf32>
    %cst_4 = arith.constant 9.99999974E-6 : f32
    %15 = vector.broadcast %cst_4 : f32 to vector<32x1xf32>
    %16 = arith.addf %12, %15 : vector<32x1xf32>
    %17 = math.rsqrt %16 : vector<32x1xf32>
    %18 = vector.broadcast %17 : vector<32x1xf32> to vector<32x128xf32>
    %19 = arith.mulf %14, %18 : vector<32x128xf32>
    %c0_5 = arith.constant 0 : index
    %c0_6 = arith.constant 0 : index
    %20 = vector.load %arg6[%c0_5, %c0_6] : memref<1x128xf32, #tpu.memory_space<vmem>>, vector<1x128xf32>
    %21 = vector.broadcast %20 : vector<1x128xf32> to vector<32x128xf32>
    %22 = arith.mulf %19, %21 : vector<32x128xf32>
    %c0_7 = arith.constant 0 : index
    %c0_8 = arith.constant 0 : index
    %23 = vector.load %arg7[%c0_7, %c0_8] : memref<1x128xf32, #tpu.memory_space<vmem>>, vector<1x128xf32>
    %24 = vector.broadcast %23 : vector<1x128xf32> to vector<32x128xf32>
    %25 = arith.addf %22, %24 : vector<32x128xf32>
    %26 = arith.truncf %25 : vector<32x128xf32> to vector<32x128xbf16>
    %c0_9 = arith.constant 0 : index
    %c0_10 = arith.constant 0 : index
    %27 = vector.load %arg4[%c0_9, %c0_10] : memref<128x128xbf16, #tpu.memory_space<vmem>>, vector<128x128xbf16>
    %cst_11 = arith.constant dense<0.000000e+00> : vector<32x128xf32>
    %28 = tpu.matmul %26, %27, %cst_11 {dimension_numbers = #tpu.dot_dimension_numbers<[1], [0], [0], [1], [0, 0, 1, 1], [], []>} : vector<32x128xbf16>, vector<128x128xbf16>, vector<32x128xf32> -> vector<32x128xf32>
    %c0_12 = arith.constant 0 : index
    %c0_13 = arith.constant 0 : index
    %29 = vector.load %arg5[%c0_12, %c0_13] : memref<1x128xf32, #tpu.memory_space<vmem>>, vector<1x128xf32>
    %30 = vector.broadcast %29 : vector<1x128xf32> to vector<32x128xf32>
    %31 = arith.addf %28, %30 : vector<32x128xf32>
    %32 = arith.truncf %31 : vector<32x128xf32> to vector<32x128xbf16>
    %c0_14 = arith.constant 0 : index
    %c0_15 = arith.constant 0 : index
    %33 = vector.load %arg8[%c0_14, %c0_15] : memref<32x128xbf16, #tpu.memory_space<vmem>>, vector<32x128xbf16>
    tpu.vector_store %arg8[%c0_14, %c0_15], %32 {strides = array<i32>} : memref<32x128xbf16, #tpu.memory_space<vmem>>, vector<32x128xbf16>,
    return
  }
  func.func @transform_0(%arg0: i32, %arg1: i32, %arg2: i32) -> (i32, i32) {
    %c0_i32 = arith.constant 0 : i32
    return %arg0, %arg2 : i32, i32
  }
  func.func @transform_1(%arg0: i32, %arg1: i32, %arg2: i32) -> (i32, i32) {
    %c0_i32 = arith.constant 0 : i32
    return %arg2, %arg1 : i32, i32
  }
  func.func @transform_2(%arg0: i32, %arg1: i32, %arg2: i32) -> (i32, i32) {
    %c0_i32 = arith.constant 0 : i32
    %c0_i32_0 = arith.constant 0 : i32
    return %c0_i32, %arg1 : i32, i32
  }
  func.func @transform_3(%arg0: i32, %arg1: i32, %arg2: i32) -> (i32, i32) {
    %c0_i32 = arith.constant 0 : i32
    %c0_i32_0 = arith.constant 0 : i32
    %c0_i32_1 = arith.constant 0 : i32
    return %c0_i32, %c0_i32_0 : i32, i32
  }
  func.func @transform_4(%arg0: i32, %arg1: i32, %arg2: i32) -> (i32, i32) {
    %c0_i32 = arith.constant 0 : i32
    %c0_i32_0 = arith.constant 0 : i32
    %c0_i32_1 = arith.constant 0 : i32
    return %c0_i32, %c0_i32_0 : i32, i32
  }
  func.func @transform_5(%arg0: i32, %arg1: i32, %arg2: i32) -> (i32, i32) {
    %c0_i32 = arith.constant 0 : i32
    return %arg0, %arg1 : i32, i32
  }
}

</mosaic_0001>

<bundles_post_ra>
// kernel: tpu_custom_call.1
= control target key start
LH: loop header
LB: loop body
LE: loop exit
PB: predicated region body
PF: predicated region fallthrough
CT: control target
= control target key end

     0   :  { %10 = vsyncpa [#allocation3], 0  ;;  %s1260_s0 = inlined_call_operand.hbm [shape: bf16[32,128], index: 0, kind: input, shape index: {}]   ;;  %s1261_s1 = inlined_call_operand.hbm [shape: bf16[128,384], index: 1, kind: input, shape index: {}]   ;;  %s1262_s2 = inlined_call_operand.vmem [shape: f32[1,384], index: 2, kind: input, shape index: {}]   ;;  %s1263_s3 = inlined_call_operand.vmem [shape: f32[1,128], index: 3, kind: input, shape index: {}]   ;;  %s1264_s4 = inlined_call_operand.vmem [shape: f32[1,128], index: 4, kind: input, shape index: {}]   ;;  %s1265_s5 = inlined_call_operand.hbm [shape: bf16[32,384], index: 5, kind: output, shape index: {}]  }
   0x1   :  { %11 = vsyncpa [#allocation6], 0 }
   0x2   :  { %13 = vsyncpa [#allocation6 + $0x1], 0 }
   0x3   :  { %14 = vsyncpa [#allocation4], 0 }
   0x4   :  { %16 = vsyncpa [#allocation4 + $0x1], 0  ;;  %s1022_s18 = smov 0   ;;  %s1024_s19 = smov 0  }
   0x5   :  { %s1026_s20 = smov 0   ;;  %s1028_s21 = smov 0  }
   0x6   :  { %s1030_s22 = smov 0   ;;  %s1032_s23 = smov 0  }
   0x7 LB: > { %s658_s24 = sadd.s32 4294967295, %s981_s23   ;;  %s659_s25 = sadd.s32 4294967294, %s981_s23   ;;  %s981_s23 = sphi %s1032_s23, %s22_s23   ;;  %s977_s22 = sphi %s1030_s22, %s1297_s22   ;;  %s973_s21 = sphi %s1028_s21, %s1296_s21   ;;  %s969_s20 = sphi %s1026_s20, %s1295_s20   ;;  %s965_s19 = sphi %s1024_s19, %s1294_s19   ;;  %s961_s18 = sphi %s1022_s18, %s1293_s18  }
   0x8   : > { %p85_p0 = scmp.ne.s32.totalorder %s969_s20, %s965_s19  ;;  %p86_p1 = scmp.eq.s32.totalorder %s981_s23, 0 }
   0x9   : > { %p91_p2 = scmp.ne.s32.totalorder %s965_s19, %s961_s18  ;;  %p1059_p3 = scmp.eq.s32.totalorder %s658_s24, 0 }
   0xa   : > { %p1063_p4 = por %p86_p1, %p85_p0  ;;  %p185_p5 = scmp.eq.s32.totalorder %s658_s24, 2 }
   0xb   : > { %s1275_s26 = scalar_select %p1059_p3, 1, 0 }
   0xc   : > { %p1069_p6 = por %p1059_p3, %p91_p2  ;;  %p191_p7 = scmp.eq.s32.totalorder %s659_s25, 2 }
   0xd   : > { %p1073_p8 = por %p185_p5, %p85_p0  ;;  %p660_p9 = scmp.ge.s32.totalorder %s981_s23, 1 }
   0xe   : > { %s1277_s28 = scalar_select %p1069_p6, 1, 0 }
   0xf   : > { %s1278_s29 = scalar_select %p1073_p8, 1, 0 }
  0x10   : > { %p1078_p10 = por %p191_p7, %p91_p2  ;;  %p198_p11 = scmp.lt.s32.totalorder %s981_s23, 4 }
  0x11   : > { %s983_s7 = smov [#allocation2]   ;;  %p763_p0 = scmp.lt.s32.totalorder %s981_s23, 3 }
  0x12   : > { %s1279_s30 = scalar_select %p1078_p10, 1, 0 }
  0x13   : > { %p1083_p12 = pnand %p660_p9, %p198_p11  ;;  %s214_s8 = sshll.u32 %s983_s7, 4  ;;  %s215_s8 = int_to_ptr.vmem [resolvable:$true] %s214_s8 }
  0x14   : > { %1280 = sst [smem:[#allocation11_spill]] %s1279_s30  ;;  %p1098_p2 = pnand %p763_p0, %p1063_p4 }
  0x15   : > { %s1281_s6 = scalar_select %p1083_p12, 1, 0 }
  0x16   : > { %p750_p13 = pneg %p1083_p12  ;;  %s37_s11 = sadd.s32 1, %s977_s22 }
  0x17   : > { %s1283_s10 = scalar_select %p1098_p2, 1, 0 }
  0x18   : > { %p1092_p1 = pnand %p750_p13, %p1059_p3  ;;  %s837_s14 = scalar_lea.hbm %s1260_s0, 256 }
  0x19   : > { %p838_p5 = scmp.ne.s32.totalorder %s1260_s0, %s837_s14  ;;  %p844_p4 = scmp.lt.u32.totalorder %s837_s14, %s1260_s0 }
  0x1a   : > { %p839_p7 = pneg %p1092_p1 }
  0x1c   : > { %p840_p9 = pnand %p839_p7, %p838_p5 }
  0x1e   : > { %p841_p11 = pneg %p840_p9 }
  0x20   : > { %p846_p13 = pnand %p844_p4, %p841_p11 }
  0x22   : > { %849 = shalt.err (!%p846_p13)
}
  0x23   : > { %s850_s25 = scalar_lea.vmem %s215_s8, 256  ;;  %p858_p6 = scmp.lt.s32.totalorder %s215_s8, %s215_s8 }
  0x24   : > { %p851_p0 = scmp.ne.s32.totalorder %s215_s8, %s850_s25  ;;  %p859_p3 = scmp.lt.s32.totalorder %s850_s25, %s850_s25 }
  0x26   : > { %p853_p10 = pnand %p851_p0, %p839_p7  ;;  %p860_p12 = por %p859_p3, %p858_p6 }
  0x28   : > { %p854_p8 = pneg %p853_p10 }
  0x2a   : > { %p861_p2 = pnand %p860_p12, %p854_p8 }
  0x2c   : > { %864 = shalt.err (!%p861_p2)
}
  0x2d   : > { %s1273_s27 = smov 64   ;;  %s1274_s7 = smov 4  }
  0x2e   : > { %753 = dma.hbm_to_vmem [thread:$0]  (!%p1092_p1), %s1260_s0, 256, %s215_s8, [#allocation3], %s1273_s27, %s1273_s27, %s1274_s7  }
  0x2f   : > { %p39_p10 = scmp.ge.s32.totalorder %s37_s11, 3  ;;  %s78_s14 = sadd.s32 1, %s969_s20 }
  0x30   : > { %s234_s15 = sand.u32 1, %s969_s20   ;;  %s664_s24 = sshll.u32 %s977_s22, 6 }
  0x31   : > { %s1299_s11 = smov (%p39_p10, %s37_s11), 0  ;;  %s663_s16 = sshll.u32 %s234_s15, 6 }
  0x32   : > { %s74_s17 = ssub.s32 %s977_s22, %s1299_s11  ;;  %s1132_s30 = scalar_lea.hbm %s1261_s1, %s664_s24 }
  0x33   : > { %p76_p3 = scmp.eq.s32.totalorder %s74_s17, 0  ;;  %s238_s8 = scalar_lea.vmem [#allocation5], %s663_s16 }
  0x34   : > { %s247_s12 = sshll.u32 %s238_s8, 4  ;;  %s1139_s27 = scalar_lea.sflag [#allocation6], %s234_s15  ;;  %s1137_s12 = int_to_ptr.vmem [resolvable:$true] %s247_s12 }
  0x35   : > { %s1135_s13 = scalar_select %p76_p3, %s969_s20, %s78_s14  }
  0x36   : > { %s865_s7 = scalar_lea.hbm %s1132_s30, 1024  ;;  %p1284_p8 = scmp.ne.s32.totalorder %s1283_s10, 0 }
  0x37   : > { %p866_p6 = scmp.ne.s32.totalorder %s1132_s30, %s865_s7  ;;  %s870_s9 = scalar_lea.hbm %s1261_s1, 3072 }
  0x38   : > { %p867_p12 = pneg %p1284_p8  ;;  %p871_p5 = scmp.lt.u32.totalorder %s1132_s30, %s1261_s1 }
  0x39   : > { %p872_p7 = scmp.lt.u32.totalorder %s870_s9, %s865_s7  ;;  %p874_p11 = scmp.lt.u32.totalorder %s865_s7, %s1132_s30 }
  0x3a   : > { %p868_p1 = pnand %p867_p12, %p866_p6 }
  0x3b   : > { %p873_p9 = por %p872_p7, %p871_p5 }
  0x3c   : > { %p869_p2 = pneg %p868_p1 }
  0x3d   : > { %p875_p4 = por %p874_p11, %p873_p9 }
  0x3f   : > { %p876_p13 = pnand %p875_p4, %p869_p2 }
  0x41   : > { %879 = shalt.err (!%p876_p13)
}
  0x42   : > { %s880_s14 = scalar_lea.vmem %s1137_s12, 1024  ;;  %s986_s15 = smov [#allocation5]  }
  0x43   : > { %p881_p0 = scmp.ne.s32.totalorder %s1137_s12, %s880_s14  ;;  %s885_s8 = sshll.u32 %s986_s15, 4  ;;  %s886_s8 = int_to_ptr.vmem [resolvable:$false] %s885_s8 }
  0x44   : > { %s887_s17 = scalar_lea.vmem %s886_s8, 2048  ;;  %p888_p6 = scmp.lt.s32.totalorder %s1137_s12, %s886_s8 }
  0x45   : > { %p883_p10 = pnand %p881_p0, %p867_p12  ;;  %p889_p1 = scmp.lt.s32.totalorder %s887_s17, %s880_s14 }
  0x47   : > { %p884_p3 = pneg %p883_p10  ;;  %p890_p5 = por %p889_p1, %p888_p6 }
  0x49   : > { %p891_p7 = pnand %p890_p5, %p884_p3 }
  0x4b   : > { %894 = shalt.err (!%p891_p7)
}
  0x4c   : > { %s987_s7 = smov 192   ;;  %s1285_s24 = smov 4  }
  0x4d   : > { %s1286_s9 = smov 64   ;;  %p1287_p12 = scmp.ne.s32.totalorder %s1281_s6, 0 }
  0x4e   : > { %757 = dma.hbm_to_vmem [thread:$0]  (!%p1284_p8), %s1132_s30, 1024, %s1137_s12, %s1139_s27, %s987_s7, %s1286_s9, %s1285_s24  }
  0x4f   : > { %265 = sbr.rel (%p1287_p12) target bundleno = 650 (0x28a), region = 40  ;;  %p1288_p2 = scmp.ne.s32.totalorder (!%p1287_p12), %s1275_s26, 0 }
  0x56   : > { %948 = dma.done.wait (%p1288_p2), [#allocation3], 256  }
  0x57   : > { %950 = vsyncadd (%p1288_p2), [#allocation3], 4294967040  ;;  %s1176_s16 = sand.u32 1, %s965_s19   ;;  %p1289_p8 = scmp.ne.s32.totalorder %s1277_s28, 0 }
  0x58   : > { %s667_s10 = sshll.u32 %s1176_s16, 6  ;;  %s272_s25 = scalar_lea.sflag [#allocation6], %s1176_s16 }
  0x59   : > { %s1180_s14 = scalar_lea.vmem [#allocation5], %s667_s10 }
  0x5a   : > { %952 = dma.done.wait (%p1289_p8), %s272_s25, 1024  }
  0x5b   : > { %954 = vsyncadd (%p1289_p8), %s272_s25, 4294966272  ;;  %v693_v0 = vld [vmem:[#allocation2] sm:$0xff]   ;;  %v710_v1 = vld [vmem:[#allocation2 + $0x8] sm:$0xff]   ;;  %p307_p9 = scmp.lt.s32.totalorder %s973_s21, 2  ;;  %s668_s12 = sshll.u32 %s1176_s16, 4 }
  0x5c   : > { %v694_v2 = vunpack.c.l.bf16 %v693_v0  ;;  %v698_v3 = vunpack.c.l.bf16 %v710_v1  ;;  %v695_v4 = vunpack.c.h.bf16 %v693_v0  ;;  %v699_v5 = vunpack.c.h.bf16 %v710_v1  ;;  %v821_v6 = vld [vmem:[%s1180_s14] sm:$0xff]   ;;  %v822_v23 = vld [vmem:[%s1180_s14 + $0x8] sm:$0xff]   ;;  %v823_v24 = vld [vmem:[%s1180_s14 + $0x10] sm:$0xff]   ;;  %s304_s7 = scalar_lea.vmem [#allocation7], %s668_s12  ;;  %s685_s9 = sshll.u32 %s973_s21, 6 }
  0x5d   : > { %722 = vmatprep.subr.bf16.mxu0 %v821_v6  ;;  %v824_v25 = vld [vmem:[%s1180_s14 + $0x18] sm:$0xff]   ;;  %v825_v26 = vld [vmem:[%s1180_s14 + $0x20] sm:$0xff]   ;;  %v826_v27 = vld [vmem:[%s1180_s14 + $0x28] sm:$0xff]   ;;  %s308_s27 = scalar_select %p307_p9, %s973_s21, 2 }
  0x5e   : > { %320 = vadd.xlane.f32.xlu0 %v694_v2  ;;  %324 = vadd.xlane.f32.xlu1 %v698_v3  ;;  %v827_v28 = vld [vmem:[%s1180_s14 + $0x30] sm:$0xff]   ;;  %v828_v29 = vld [vmem:[%s1180_s14 + $0x38] sm:$0xff]   ;;  %s545_s24 = sshll.u32 %s304_s7, 4  ;;  %s1212_s14 = scalar_lea.hbm %s1265_s5, %s685_s9  ;;  %s1207_s24 = int_to_ptr.vmem [resolvable:$true] %s545_s24 }
  0x5f   : > { %723 = vmatpush3.bf16.msra.mxu0 %v821_v6  ;;  %v669_v44 = vld [vmem:[%s1263_s3] ss:$0 sm:$0xff]  ;;  %s309_s17 = scalar_lea.vmem %s1262_s2, %s308_s27  ;;  %s530_s21 = scalar_lea.sflag [#allocation4], %s1176_s16 }
  0x60   : > { %724 = vmatprep.subr.bf16.mxu0 %v822_v23  ;;  %v670_v49 = vld [vmem:[%s1264_s4] ss:$0 sm:$0xff]  ;;  %s895_s26 = scalar_lea.vmem %s1207_s24, 256  ;;  %p1290_p4 = scmp.ne.s32.totalorder %s1278_s29, 0 }
  0x61   : > { %v671_v63 = vld [vmem:[%s309_s17] ss:$0 sm:$0xff]  ;;  %p896_p11 = scmp.ne.s32.totalorder %s1207_s24, %s895_s26  ;;  %s988_s28 = smov [#allocation7]  }
  0x62   : > { %322 = vadd.xlane.f32.xlu0 %v695_v4  ;;  %326 = vadd.xlane.f32.xlu1 %v699_v5  ;;  %s899_s30 = sshll.u32 %s988_s28, 4  ;;  %s900_s30 = int_to_ptr.vmem [resolvable:$false] %s899_s30 }
  0x63   : > { %725 = vmatpush3.bf16.msra.mxu0 %v822_v23  ;;  %p897_p13 = pnand %p896_p11, %p1290_p4  ;;  %s901_s6 = scalar_lea.vmem %s900_s30, 512 }
  0x64   : > { %726 = vmatprep.subr.bf16.mxu0 %v823_v24  ;;  %p902_p10 = scmp.lt.s32.totalorder %s1207_s24, %s900_s30  ;;  %p903_p3 = scmp.lt.s32.totalorder %s901_s6, %s895_s26 }
  0x65   : > { %p898_p0 = pneg %p897_p13 }
  0x66   : > { %p904_p6 = por %p903_p3, %p902_p10 }
  0x67   : > { %727 = vmatpush3.bf16.msra.mxu0 %v823_v24 }
  0x68   : > { %728 = vmatprep.subr.bf16.mxu0 %v824_v25  ;;  %p905_p1 = pnand %p904_p6, %p898_p0 }
  0x6b   : > { %729 = vmatpush3.bf16.msra.mxu0 %v824_v25 }
  0x6c   : > { %730 = vmatprep.subr.bf16.mxu0 %v825_v26 }
  0x6f   : > { %731 = vmatpush3.bf16.msra.mxu0 %v825_v26 }
  0x70   : > { %732 = vmatprep.subr.bf16.mxu0 %v826_v27 }
  0x73   : > { %733 = vmatpush3.bf16.msra.mxu0 %v826_v27 }
  0x74   : > { %734 = vmatprep.subr.bf16.mxu0 %v827_v28 }
  0x77   : > { %735 = vmatpush3.bf16.msra.mxu0 %v827_v28 }
  0x78   : > { %736 = vmatprep.subr.bf16.mxu0 %v828_v29 }
  0x7b   : > { %737 = vmatpush3.bf16.msra.mxu0 %v828_v29 }
  0xeb   : > { %v321_v7 = vpop.xlane.xlu0 %320  ;;  %v325_v8 = vpop.xlane.xlu1 %324 }
  0xec   : > { %v329_v9 = vmul.f32 0.0078125, %v321_v7  ;;  %v331_v10 = vmul.f32 0.0078125, %v325_v8 }
  0xee   : > { %v333_v11 = vsub.f32 %v694_v2, %v329_v9  ;;  %v335_v12 = vsub.f32 %v698_v3, %v331_v10 }
  0xef   : > { %v323_v13 = vpop.xlane.xlu0 %322  ;;  %v327_v14 = vpop.xlane.xlu1 %326 }
  0xf0   : > { %v330_v15 = vmul.f32 0.0078125, %v323_v13  ;;  %v337_v16 = vmul.f32 %v333_v11, %v333_v11  ;;  %v332_v17 = vmul.f32 0.0078125, %v327_v14  ;;  %v339_v20 = vmul.f32 %v335_v12, %v335_v12 }
  0xf2   : > { %v334_v18 = vsub.f32 %v695_v4, %v330_v15  ;;  %341 = vadd.xlane.f32.xlu0 %v337_v16  ;;  %v336_v19 = vsub.f32 %v699_v5, %v332_v17 }
  0xf4   : > { %v338_v21 = vmul.f32 %v334_v18, %v334_v18  ;;  %v340_v22 = vmul.f32 %v336_v19, %v336_v19 }
  0xf6   : > { %345 = vadd.xlane.f32.xlu0 %v339_v20  ;;  %343 = vadd.xlane.f32.xlu1 %v338_v21 }
  0xfa   : > { %347 = vadd.xlane.f32.xlu1 %v340_v22 }
 0x17f   : > { %v342_v30 = vpop.xlane.xlu0 %341 }
 0x180   : > { %v349_v31 = vmul.f32 0.0078125, %v342_v30 }
 0x182   : > { %v353_v32 = vadd.f32 1e-05, %v349_v31 }
 0x183   : > { %v344_v33 = vpop.xlane.xlu1 %343  ;;  %v346_v34 = vpop.xlane.xlu0 %345 }
 0x184   : > { %829 = vrsqrt.f32 %v353_v32  ;;  %v350_v35 = vmul.f32 0.0078125, %v344_v33  ;;  %v351_v36 = vmul.f32 0.0078125, %v346_v34 }
 0x186   : > { %v354_v37 = vadd.f32 1e-05, %v350_v35  ;;  %v355_v38 = vadd.f32 1e-05, %v351_v36 }
 0x187   : > { %v348_v39 = vpop.xlane.xlu1 %347 }
 0x188   : > { %831 = vrsqrt.f32 %v354_v37  ;;  %v352_v40 = vmul.f32 0.0078125, %v348_v39 }
 0x189   : > { %833 = vrsqrt.f32 %v355_v38 }
 0x18a   : > { %v356_v41 = vadd.f32 1e-05, %v352_v40 }
 0x18c   : > { %835 = vrsqrt.f32 %v356_v41 }
 0x18e   : > { %v830_v42 = vpop.eup %829 }
 0x18f   : > { %v361_v43 = vmul.f32 %v830_v42, %v333_v11 }
 0x191   : > { %v372_v48 = vmul.f32 %v669_v44, %v361_v43 }
 0x192   : > { %v832_v45 = vpop.eup %831 }
 0x193   : > { %v834_v46 = vpop.eup %833  ;;  %v362_v47 = vmul.f32 %v832_v45, %v334_v18  ;;  %v383_v53 = vadd.f32 %v670_v49, %v372_v48 }
 0x194   : > { %v363_v50 = vmul.f32 %v834_v46, %v335_v12 }
 0x195   : > { %v373_v51 = vmul.f32 %v669_v44, %v362_v47 }
 0x196   : > { %v836_v52 = vpop.eup %835  ;;  %v374_v56 = vmul.f32 %v669_v44, %v363_v50 }
 0x197   : > { %v384_v54 = vadd.f32 %v670_v49, %v373_v51  ;;  %v364_v55 = vmul.f32 %v836_v52, %v336_v19 }
 0x198   : > { %v385_v59 = vadd.f32 %v670_v49, %v374_v56 }
 0x199   : > { %v387_v57 = vpack.c.bf16 %v384_v54, %v383_v53  ;;  %v375_v58 = vmul.f32 %v669_v44, %v364_v55 }
 0x19b   : > { %738 = vmatprep.mubr.bf16.mxu0 %v387_v57  ;;  %v386_v60 = vadd.f32 %v670_v49, %v375_v58 }
 0x19d   : > { %v388_v61 = vpack.c.bf16 %v386_v60, %v385_v59 }
 0x19f   : > { %739 = vmatmul.mubr.bf16.vlgmr.msra.gmra.mrb[0].mxu0 %v388_v61 }
 0x272   : > { %v740_v62 = vpop.f32.mrb[0].mxu0 }
 0x273   : > { %v494_v0 = vpop.f32.mrb[1].mxu0  ;;  %v503_v2 = vadd.f32 %v740_v62, %v671_v63 }
 0x274   : > { %v741_v1 = vpop.f32.mrb[2].mxu0  ;;  %v495_v5 = vadd.f32 %v671_v63, %v494_v0 }
 0x275   : > { %v506_v3 = vadd.f32 %v741_v1, %v671_v63  ;;  %v497_v4 = vpop.f32.mrb[3].mxu0 }
 0x276   : > { %v498_v6 = vadd.f32 %v671_v63, %v497_v4 }
 0x277   : > { %v708_v7 = vpack.c.bf16 %v506_v3, %v503_v2 }
 0x278   : > { %v703_v8 = vpack.c.bf16 %v498_v6, %v495_v5 }
 0x279   : > { %711 = vst [vmem:[%s304_s7 + $0x8] sm:$0xff] %v708_v7  }
 0x27a   : > { %704 = vst [vmem:[%s304_s7] sm:$0xff] %v703_v8  }
 0x27b   : > { %908 = shalt.err (!%p905_p1)
}
 0x27c   : > { %s909_s27 = scalar_lea.hbm %s1212_s14, 256  ;;  %s913_s8 = scalar_lea.hbm %s1265_s5, 768 }
 0x27d   : > { %p910_p5 = scmp.ne.s32.totalorder %s1212_s14, %s909_s27  ;;  %p914_p2 = scmp.lt.u32.totalorder %s1212_s14, %s1265_s5 }
 0x27e   : > { %p915_p8 = scmp.lt.u32.totalorder %s913_s8, %s909_s27  ;;  %p917_p11 = scmp.lt.u32.totalorder %s909_s27, %s1212_s14 }
 0x27f   : > { %p911_p7 = pnand %p910_p5, %p1290_p4 }
 0x280   : > { %p916_p9 = por %p915_p8, %p914_p2 }
 0x281   : > { %p912_p12 = pneg %p911_p7 }
 0x282   : > { %p918_p13 = por %p917_p11, %p916_p9 }
 0x284   : > { %p919_p0 = pnand %p918_p13, %p912_p12 }
 0x286   : > { %922 = shalt.err (!%p919_p0)
}
 0x287   : > { %s989_s9 = smov 64   ;;  %s990_s10 = smov 192  }
 0x288   : > { %s991_s25 = smov 4  }
 0x289   : > { %748 = dma.vmem_to_hbm [thread:$0]  (%p1290_p4), %s1207_s24, 256, %s1212_s14, %s530_s21, %s989_s9, %s990_s10, %s991_s25  }
 0x28a PF: > { %s1291_s26 = sld [smem:[#allocation11_spill]]  ;;  %p765_p10 = scmp.ge.s32.totalorder %s981_s23, 2 }
 0x28b   : > { %s560_s28 = sand.u32 1, %s961_s18  }
 0x28c   : > { %s561_s30 = scalar_lea.sflag [#allocation4], %s560_s28 }
 0x290   : > { %p1292_p3 = scmp.ne.s32.totalorder %s1291_s26, 0 }
 0x292   : > { %p759_p6 = pnand %p765_p10, %p1292_p3 }
 0x294   : > { %956 = dma.done.wait (!%p759_p6), %s561_s30, 256  }
 0x295   : > { %958 = vsyncadd (!%p759_p6), %s561_s30, 4294967040  ;;  %s22_s23 = sadd.s32 1, %s981_s23   ;;  %s1293_s18 = smov %s965_s19 }
 0x296   : > { %p19_p1 = scmp.ge.s32.totalorder %s22_s23, 5   ;;  %s1294_s19 = smov %s969_s20 }
 0x297   : > { %s1295_s20 = smov %s1135_s13  ;;  %s1296_s21 = smov %s977_s22 }
 0x298   : > { %s1297_s22 = smov %s1299_s11  ;;  %21 = sbr.rel (!%p19_p1) target bundleno = 7 (0x7), region = 94 }
 0x29f   :  { %566 = vsyncpa [#allocation3], 1 }
 0x2a0   :  { %568 = vsyncpa [#allocation3 + $0x1], 1 }
 0x2a1   :  { %569 = vsyncpa [#allocation6], 1 }
 0x2a2   :  { %571 = vsyncpa [#allocation6 + $0x1], 1 }
 0x2a3   :  { %572 = vsyncpa [#allocation4], 1 }
 0x2a4   :  { %574 = vsyncpa [#allocation4 + $0x1], 1 }

</bundles_post_ra>
